<compile_context>
chip_gen: v5e
topology: v5e:2x2
jax: 0.10.0
libtpu: 0.0.40
codegen_flags: <defaults>
</compile_context>

<pallas_src>
import jax
import jax.numpy as jnp
from jax.experimental import pallas as pl
from jax.experimental.pallas import tpu as pltpu


def munet_kernel(x_ref, w1_ref, b1_ref, w2_ref, b2_ref, w3_ref, b3_ref, o_ref):
    x = x_ref[...]                                                      # (3, TB)
    h1 = jnp.dot(w1_ref[...], x, preferred_element_type=jnp.float32)    # (128, TB)
    h1 = jnp.maximum(h1 + b1_ref[...], 0.0)
    h2 = jnp.dot(w2_ref[...], h1, preferred_element_type=jnp.float32)   # (64, TB)
    h2 = jnp.maximum(h2 + b2_ref[...], 0.0)
    # fc_mu (64 -> 1): VPU multiply + cross-sublane reduction; avoids an MXU
    # pass whose result would be a single output row.
    mu = jnp.sum(w3_ref[...] * h2, axis=0, keepdims=True) + b3_ref[...]  # (1, TB)
    o_ref[...] = jnp.tanh(mu) * 2.0


def munet_forward(x, params, *, tile_b=512):
    """x: (B, 3) float32 (PyTorch NC layout).  Returns (B, 1)."""
    w1, b1, w2, b2, w3c, b3 = params
    assert tile_b % 128 == 0, "tile_b must be a multiple of 128 (lane width)"
    B = x.shape[0]

    # Feature-major: batch on lanes.  Pad the batch up to a multiple of tile_b
    # so every block is lane-dense; padded columns are computed and discarded.
    xt = jnp.transpose(x)                                # (3, B)
    n_tiles = pl.cdiv(B, tile_b)
    Bp = n_tiles * tile_b
    if Bp != B:
        xt = jnp.pad(xt, ((0, 0), (0, Bp - B)))

    out = pl.pallas_call(
        munet_kernel,
        out_shape=jax.ShapeDtypeStruct((1, Bp), jnp.float32),
        grid=(n_tiles,),
        in_specs=[
            pl.BlockSpec((3, tile_b), lambda i: (0, i)),     # x tile (streamed)
            pl.BlockSpec((128, 3), lambda i: (0, 0)),        # w1 (VMEM-resident)
            pl.BlockSpec((128, 1), lambda i: (0, 0)),        # b1
            pl.BlockSpec((64, 128), lambda i: (0, 0)),       # w2
            pl.BlockSpec((64, 1), lambda i: (0, 0)),         # b2
            pl.BlockSpec((64, 1), lambda i: (0, 0)),         # w3 (column form)
            pl.BlockSpec((1, 1), lambda i: (0, 0)),          # b3
        ],
        out_specs=pl.BlockSpec((1, tile_b), lambda i: (0, i)),
        compiler_params=pltpu.CompilerParams(
            dimension_semantics=("parallel",)),              # megacore on v7x
    )(xt, w1, b1, w2, b2, w3c, b3)

    return jnp.transpose(out[:, :B])                         # (B, 1)


def init_params(key):
    """PyTorch-style Linear init (U[-1/sqrt(fan_in), +]), stored in kernel layout."""
    def linear(k, fan_in, fan_out):
        kw, kb = jax.random.split(k)
        bound = float(fan_in) ** -0.5
        w = jax.random.uniform(kw, (fan_out, fan_in), jnp.float32, -bound, bound)
        b = jax.random.uniform(kb, (fan_out, 1), jnp.float32, -bound, bound)
        return w, b

    k1, k2, k3 = jax.random.split(key, 3)
    w1, b1 = linear(k1, 3, 128)      # (128, 3), (128, 1)
    w2, b2 = linear(k2, 128, 64)     # (64, 128), (64, 1)
    w3, b3 = linear(k3, 64, 1)       # (1, 64),  (1, 1)
    w3c = jnp.transpose(w3)          # (64, 1): column form for the VPU reduction
    return (w1, b1, w2, b2, w3c, b3)


def munet_reference(x, params):
    """Pure-JAX reference (PyTorch semantics) for correctness check."""
    w1, b1, w2, b2, w3c, b3 = params
    h1 = jnp.maximum(x @ w1.T + b1[:, 0], 0.0)
    h2 = jnp.maximum(h1 @ w2.T + b2[:, 0], 0.0)
    return jnp.tanh(h2 @ w3c + b3) * 2.0


if __name__ == "__main__":
    key = jax.random.PRNGKey(0)
    k_params, k_x, k_x2 = jax.random.split(key, 3)
    params = init_params(k_params)

    # Small smoke test (state dim = 3, e.g. Pendulum).
    B = 8
    x = jax.random.normal(k_x, (B, 3), jnp.float32)
    out = jax.block_until_ready(munet_forward(x, params))
    ref = munet_reference(x, params)
    assert out.shape == (B, 1)
    assert jnp.allclose(out, ref, atol=1e-5, rtol=1e-5), \
        float(jnp.max(jnp.abs(out - ref)))

    # Exercise the multi-tile grid + batch-padding path.
    B2 = 1000
    x2 = jax.random.normal(k_x2, (B2, 3), jnp.float32)
    out2 = jax.block_until_ready(munet_forward(x2, params, tile_b=512))
    ref2 = munet_reference(x2, params)
    assert out2.shape == (B2, 1)
    assert jnp.allclose(out2, ref2, atol=1e-5, rtol=1e-5), \
        float(jnp.max(jnp.abs(out2 - ref2)))

    print("KERNEL_OK")
</pallas_src>

<mosaic_0001>
module attributes {stable_mosaic.version = 11 : i64} {
  func.func @munet_kernel(%arg0: i32, %arg1: memref<3x512xf32, #tpu.memory_space<vmem>>, %arg2: memref<128x3xf32, #tpu.memory_space<vmem>>, %arg3: memref<128x1xf32, #tpu.memory_space<vmem>>, %arg4: memref<64x128xf32, #tpu.memory_space<vmem>>, %arg5: memref<64x1xf32, #tpu.memory_space<vmem>>, %arg6: memref<64x1xf32, #tpu.memory_space<vmem>>, %arg7: memref<1x1xf32, #tpu.memory_space<vmem>>, %arg8: memref<1x512xf32, #tpu.memory_space<vmem>>) attributes {dimension_semantics = [#tpu.dimension_semantics<parallel>], iteration_bounds = array<i64: 1>, scalar_prefetch = 0 : i64, scratch_operands = 0 : i64, tpu.core_type = #tpu.core_type<tc>, window_params = [{transform_indices = @transform_0, window_bounds = array<i64: 3, 512>}, {pipeline_mode = #tpu.pipeline_mode<synchronous>, transform_indices = @transform_1, window_bounds = array<i64: 128, 3>}, {pipeline_mode = #tpu.pipeline_mode<synchronous>, transform_indices = @transform_2, window_bounds = array<i64: 128, 1>}, {pipeline_mode = #tpu.pipeline_mode<synchronous>, transform_indices = @transform_3, window_bounds = array<i64: 64, 128>}, {pipeline_mode = #tpu.pipeline_mode<synchronous>, transform_indices = @transform_4, window_bounds = array<i64: 64, 1>}, {pipeline_mode = #tpu.pipeline_mode<synchronous>, transform_indices = @transform_5, window_bounds = array<i64: 64, 1>}, {pipeline_mode = #tpu.pipeline_mode<synchronous>, transform_indices = @transform_6, window_bounds = array<i64: 1, 1>}, {transform_indices = @transform_7, window_bounds = array<i64: 1, 512>}]} {
    %c0 = arith.constant 0 : index
    %c0_0 = arith.constant 0 : index
    %0 = vector.load %arg1[%c0, %c0_0] : memref<3x512xf32, #tpu.memory_space<vmem>>, vector<3x512xf32>
    %c0_1 = arith.constant 0 : index
    %c0_2 = arith.constant 0 : index
    %1 = vector.load %arg2[%c0_1, %c0_2] : memref<128x3xf32, #tpu.memory_space<vmem>>, vector<128x3xf32>
    %cst = arith.constant dense<0.000000e+00> : vector<128x512xf32>
    %2 = tpu.matmul %1, %0, %cst {dimension_numbers = #tpu.dot_dimension_numbers<[1], [0], [0], [1], [0, 0, 1, 1], [], []>} : vector<128x3xf32>, vector<3x512xf32>, vector<128x512xf32> -> vector<128x512xf32>
    %c0_3 = arith.constant 0 : index
    %c0_4 = arith.constant 0 : index
    %3 = vector.load %arg3[%c0_3, %c0_4] : memref<128x1xf32, #tpu.memory_space<vmem>>, vector<128x1xf32>
    %4 = vector.broadcast %3 : vector<128x1xf32> to vector<128x512xf32>
    %5 = arith.addf %2, %4 : vector<128x512xf32>
    %cst_5 = arith.constant 0.000000e+00 : f32
    %6 = vector.broadcast %cst_5 : f32 to vector<128x512xf32>
    %7 = arith.maximumf %5, %6 : vector<128x512xf32>
    %c0_6 = arith.constant 0 : index
    %c0_7 = arith.constant 0 : index
    %8 = vector.load %arg4[%c0_6, %c0_7] : memref<64x128xf32, #tpu.memory_space<vmem>>, vector<64x128xf32>
    %cst_8 = arith.constant dense<0.000000e+00> : vector<64x512xf32>
    %9 = tpu.matmul %8, %7, %cst_8 {dimension_numbers = #tpu.dot_dimension_numbers<[1], [0], [0], [1], [0, 0, 1, 1], [], []>} : vector<64x128xf32>, vector<128x512xf32>, vector<64x512xf32> -> vector<64x512xf32>
    %c0_9 = arith.constant 0 : index
    %c0_10 = arith.constant 0 : index
    %10 = vector.load %arg5[%c0_9, %c0_10] : memref<64x1xf32, #tpu.memory_space<vmem>>, vector<64x1xf32>
    %11 = vector.broadcast %10 : vector<64x1xf32> to vector<64x512xf32>
    %12 = arith.addf %9, %11 : vector<64x512xf32>
    %cst_11 = arith.constant 0.000000e+00 : f32
    %13 = vector.broadcast %cst_11 : f32 to vector<64x512xf32>
    %14 = arith.maximumf %12, %13 : vector<64x512xf32>
    %c0_12 = arith.constant 0 : index
    %c0_13 = arith.constant 0 : index
    %15 = vector.load %arg6[%c0_12, %c0_13] : memref<64x1xf32, #tpu.memory_space<vmem>>, vector<64x1xf32>
    %16 = vector.broadcast %15 : vector<64x1xf32> to vector<64x512xf32>
    %17 = arith.mulf %16, %14 : vector<64x512xf32>
    %cst_14 = arith.constant dense<0.000000e+00> : vector<512xf32>
    %18 = vector.multi_reduction <add>, %17, %cst_14 [0] : vector<64x512xf32> to vector<512xf32>
    %19 = vector.shape_cast %18 : vector<512xf32> to vector<1x512xf32>
    %c0_15 = arith.constant 0 : index
    %c0_16 = arith.constant 0 : index
    %20 = vector.load %arg7[%c0_15, %c0_16] : memref<1x1xf32, #tpu.memory_space<vmem>>, vector<1x1xf32>
    %21 = vector.broadcast %20 : vector<1x1xf32> to vector<1x512xf32>
    %22 = arith.addf %19, %21 : vector<1x512xf32>
    %23 = math.tanh %22 : vector<1x512xf32>
    %cst_17 = arith.constant 2.000000e+00 : f32
    %24 = vector.broadcast %cst_17 : f32 to vector<1x512xf32>
    %25 = arith.mulf %23, %24 : vector<1x512xf32>
    %c0_18 = arith.constant 0 : index
    %c0_19 = arith.constant 0 : index
    %26 = vector.load %arg8[%c0_18, %c0_19] : memref<1x512xf32, #tpu.memory_space<vmem>>, vector<1x512xf32>
    tpu.vector_store %arg8[%c0_18, %c0_19], %25 {strides = array<i32>} : memref<1x512xf32, #tpu.memory_space<vmem>>, vector<1x512xf32>,
    return
  }
  func.func @transform_0(%arg0: i32) -> (i32, i32) {
    %c0_i32 = arith.constant 0 : i32
    %c0_i32_0 = arith.constant 0 : i32
    return %c0_i32, %arg0 : i32, i32
  }
  func.func @transform_1(%arg0: i32) -> (i32, i32) {
    %c0_i32 = arith.constant 0 : i32
    %c0_i32_0 = arith.constant 0 : i32
    %c0_i32_1 = arith.constant 0 : i32
    return %c0_i32, %c0_i32_0 : i32, i32
  }
  func.func @transform_2(%arg0: i32) -> (i32, i32) {
    %c0_i32 = arith.constant 0 : i32
    %c0_i32_0 = arith.constant 0 : i32
    %c0_i32_1 = arith.constant 0 : i32
    return %c0_i32, %c0_i32_0 : i32, i32
  }
  func.func @transform_3(%arg0: i32) -> (i32, i32) {
    %c0_i32 = arith.constant 0 : i32
    %c0_i32_0 = arith.constant 0 : i32
    %c0_i32_1 = arith.constant 0 : i32
    return %c0_i32, %c0_i32_0 : i32, i32
  }
  func.func @transform_4(%arg0: i32) -> (i32, i32) {
    %c0_i32 = arith.constant 0 : i32
    %c0_i32_0 = arith.constant 0 : i32
    %c0_i32_1 = arith.constant 0 : i32
    return %c0_i32, %c0_i32_0 : i32, i32
  }
  func.func @transform_5(%arg0: i32) -> (i32, i32) {
    %c0_i32 = arith.constant 0 : i32
    %c0_i32_0 = arith.constant 0 : i32
    %c0_i32_1 = arith.constant 0 : i32
    return %c0_i32, %c0_i32_0 : i32, i32
  }
  func.func @transform_6(%arg0: i32) -> (i32, i32) {
    %c0_i32 = arith.constant 0 : i32
    %c0_i32_0 = arith.constant 0 : i32
    %c0_i32_1 = arith.constant 0 : i32
    return %c0_i32, %c0_i32_0 : i32, i32
  }
  func.func @transform_7(%arg0: i32) -> (i32, i32) {
    %c0_i32 = arith.constant 0 : i32
    %c0_i32_0 = arith.constant 0 : i32
    return %c0_i32, %arg0 : i32, i32
  }
}

</mosaic_0001>

<bundles_post_ra>
// kernel: tpu_custom_call.1
= control target key start
LH: loop header
LB: loop body
LE: loop exit
PB: predicated region body
PF: predicated region fallthrough
CT: control target
= control target key end

     0   :  { %s1626_s0 = inlined_call_operand.vmem [shape: f32[3,512], index: 0, kind: input, shape index: {}]   ;;  %s1627_s1 = inlined_call_operand.vmem [shape: f32[128,3], index: 1, kind: input, shape index: {}]   ;;  %s1628_s2 = inlined_call_operand.vmem [shape: f32[128,1], index: 2, kind: input, shape index: {}]   ;;  %s1629_s3 = inlined_call_operand.vmem [shape: f32[64,128], index: 3, kind: input, shape index: {}]   ;;  %s1630_s4 = inlined_call_operand.vmem [shape: f32[64,1], index: 4, kind: input, shape index: {}]   ;;  %s1631_s5 = inlined_call_operand.vmem [shape: f32[64,1], index: 5, kind: input, shape index: {}]   ;;  %s1632_s6 = inlined_call_operand.<no memory space> [shape: f32[1,1], index: 6, kind: input, shape index: {}]   ;;  %s1633_s7 = inlined_call_operand.hbm [shape: f32[1,512], index: 7, kind: output, shape index: {}]  }
   0x1   :  { %v12_v0 = vstv %s1632_s6 }
   0x2   :  { %13 = vst [vmem:[#allocation2] sm:$0x1] %v12_v0 }
   0x3   :  { %v62_v1 = vld [vmem:[%s1628_s2 + $0x78] sm:$0xff]  ;;  %v29_v2 = vld [vmem:[%s1626_s0] sm:$0x77]  ;;  %v1079_v3 = vmov 0   ;;  %v30_v4 = vld [vmem:[%s1626_s0 + $0x8] sm:$0x77] }
   0x4   :  { %1042 = vset.pattern.permute.xlu0 %v1079_v3  ;;  %145 = vst [vmem:[#allocation1] ss:$2 sm:$0xff] %v29_v2  ;;  %1043 = vset.pattern.permute.xlu1 %v1079_v3  ;;  %v60_v5 = vld [vmem:[%s1628_s2 + $0x68] sm:$0xff]  ;;  %v58_v6 = vld [vmem:[%s1628_s2 + $0x58] sm:$0xff]  ;;  %vm201_vm0 = vcmask 1042432  }
   0x5   :  { %140 = vperm.xlu0 %1042, %v62_v1   ;;  %147 = vst [vmem:[#allocation1 + $0x10] ss:$2 sm:$0xff] %v30_v4  ;;  %1044 = vset.pattern.permute.xlu2 %v1079_v3 }
   0x6   :  { %130 = vperm.xlu1 %1043, %v60_v5   ;;  %120 = vperm.xlu2 %1044, %v58_v6  }
   0x7   :  { %14 = vsyncpa [#allocation4], 0  ;;  %v61_v7 = vld [vmem:[%s1628_s2 + $0x70] sm:$0xff]  ;;  %v31_v8 = vld [vmem:[%s1627_s1] sm:$0xff]  ;;  %vm152_vm1 = vcmask 23552   ;;  %vm944_vm2 = vcmask 1040384  }
   0x8   :  { %v59_v13 = vld [vmem:[%s1628_s2 + $0x60] sm:$0xff]  ;;  %v57_v14 = vld [vmem:[%s1628_s2 + $0x50] sm:$0xff]  ;;  %v56_v15 = vld [vmem:[%s1628_s2 + $0x48] sm:$0xff]  ;;  %vm946_vm3 = vcmask 1042434   ;;  %s963_s14 = sshll.u32 %s1633_s7, 4  ;;  %vm948_vm4 = vcmask 1041408   ;;  %s964_s14 = int_to_ptr.hbm [resolvable:$true] %s963_s14 }
   0x9   :  { %v32_v16 = vld [vmem:[%s1627_s1 + $0x8] sm:$0xff]  ;;  %v55_v17 = vld [vmem:[%s1628_s2 + $0x40] sm:$0xff]  ;;  %v54_v18 = vld [vmem:[%s1628_s2 + $0x38] sm:$0xff] }
   0xa   :  { %v53_v19 = vld [vmem:[%s1628_s2 + $0x30] sm:$0xff]  ;;  %v52_v21 = vld [vmem:[%s1628_s2 + $0x28] sm:$0xff]  ;;  %v51_v22 = vld [vmem:[%s1628_s2 + $0x20] sm:$0xff] }
   0xb   :  { %v148_v9 = vld.sshfl [vmem:[#allocation1] sm:$0xff pattern:$0x75316420]  ;;  %v149_v10 = vld.sshfl [vmem:[#allocation1 + $0x8] sm:$0xff pattern:$0x75316420] }
   0xc   :  { %972 = vmatpush.msk.msra.mxu0 %vm201_vm0, %v148_v9  ;;  %989 = vmatpush.msk.msra.mxu1 %vm201_vm0, %v149_v10  ;;  %v150_v11 = vld.sshfl [vmem:[#allocation1 + $0x10] sm:$0xff pattern:$0x75316420]  ;;  %v151_v12 = vld.sshfl [vmem:[#allocation1 + $0x18] sm:$0xff pattern:$0x75316420] }
   0xd   :  { %1006 = vmatpush.msk.msra.mxu2 %vm201_vm0, %v150_v11  ;;  %1023 = vmatpush.msk.msra.mxu3 %vm201_vm0, %v151_v12  ;;  %v33_v20 = vld [vmem:[%s1627_s1 + $0x10] sm:$0xff]  ;;  %v50_v23 = vld [vmem:[%s1628_s2 + $0x18] sm:$0xff]  ;;  %v48_v26 = vld [vmem:[%s1628_s2 + $0x8] sm:$0xff] }
   0xe   :  { %135 = vperm.xlu0 %1042, %v61_v7   ;;  %973 = vmatmul.msk.f32.vlgmr.msra.gmra.mxu0 %vm152_vm1, %v31_v8  ;;  %v34_v24 = vld [vmem:[%s1627_s1 + $0x18] sm:$0xff]  ;;  %v49_v25 = vld [vmem:[%s1628_s2 + $0x10] sm:$0xff]  ;;  %v47_v27 = vld [vmem:[%s1628_s2] sm:$0xff] }
   0xf   :  { %990 = vmatmul.msk.f32.vlgmr.msra.gmra.mxu1 %vm152_vm1, %v31_v8  ;;  %1007 = vmatmul.msk.f32.vlgmr.msra.gmra.mxu2 %vm152_vm1, %v31_v8  ;;  %v35_v28 = vld [vmem:[%s1627_s1 + $0x20] sm:$0xff]  ;;  %v36_v29 = vld [vmem:[%s1627_s1 + $0x28] sm:$0xff]  ;;  %v37_v30 = vld [vmem:[%s1627_s1 + $0x30] sm:$0xff] }
  0x10   :  { %1024 = vmatmul.msk.f32.vlgmr.msra.gmra.mxu3 %vm152_vm1, %v31_v8  ;;  %125 = vperm.xlu1 %1043, %v59_v13   ;;  %v38_v31 = vld [vmem:[%s1627_s1 + $0x38] sm:$0xff]  ;;  %v542_v32 = vld [vmem:[%s1630_s4] sm:$0xff]  ;;  %v544_v34 = vld [vmem:[%s1630_s4 + $0x10] sm:$0xff] }
  0x11   :  { %115 = vperm.xlu2 %1044, %v57_v14   ;;  %v39_v33 = vld [vmem:[%s1627_s1 + $0x40] sm:$0xff]  ;;  %v545_v35 = vld [vmem:[%s1630_s4 + $0x18] sm:$0xff]  ;;  %v40_v36 = vld [vmem:[%s1627_s1 + $0x48] sm:$0xff] }
  0x12   :  { %v787_v37 = vld [vmem:[%s1631_s5 + $0x8] sm:$0xff]  ;;  %v546_v38 = vld [vmem:[%s1630_s4 + $0x20] sm:$0xff]  ;;  %v41_v39 = vld [vmem:[%s1627_s1 + $0x50] sm:$0xff] }
  0x13   :  { %v547_v40 = vld [vmem:[%s1630_s4 + $0x28] sm:$0xff]  ;;  %v789_v41 = vld [vmem:[%s1631_s5 + $0x18] sm:$0xff]  ;;  %v790_v44 = vld [vmem:[%s1631_s5 + $0x20] sm:$0xff] }
  0x14   :  { %v42_v42 = vld [vmem:[%s1627_s1 + $0x58] sm:$0xff]  ;;  %v543_v43 = vld [vmem:[%s1630_s4 + $0x8] sm:$0xff]  ;;  %v43_v46 = vld [vmem:[%s1627_s1 + $0x60] sm:$0xff] }
  0x15   :  { %v549_v45 = vld [vmem:[%s1630_s4 + $0x38] sm:$0xff]  ;;  %v786_v47 = vld [vmem:[%s1631_s5] sm:$0xff]  ;;  %v792_v48 = vld [vmem:[%s1631_s5 + $0x30] sm:$0xff] }
  0x16   :  { %110 = vperm.xlu0 %1042, %v56_v15   ;;  %974 = vmatmul.msk.f32.gmra.mxu0 %vm152_vm1, %v32_v16  ;;  %v793_v49 = vld [vmem:[%s1631_s5 + $0x38] sm:$0xff]  ;;  %v44_v50 = vld [vmem:[%s1627_s1 + $0x68] sm:$0xff]  ;;  %v788_v51 = vld [vmem:[%s1631_s5 + $0x10] sm:$0xff] }
  0x17   :  { %991 = vmatmul.msk.f32.gmra.mxu1 %vm152_vm1, %v32_v16  ;;  %1008 = vmatmul.msk.f32.gmra.mxu2 %vm152_vm1, %v32_v16  ;;  %v45_v52 = vld [vmem:[%s1627_s1 + $0x70] sm:$0xff]  ;;  %v46_v54 = vld [vmem:[%s1627_s1 + $0x78] sm:$0xff]  ;;  %v791_v55 = vld [vmem:[%s1631_s5 + $0x28] sm:$0xff] }
  0x18   :  { %1025 = vmatmul.msk.f32.gmra.mxu3 %vm152_vm1, %v32_v16  ;;  %105 = vperm.xlu1 %1043, %v55_v17   ;;  %v548_v53 = vld [vmem:[%s1630_s4 + $0x30] sm:$0xff]  ;;  %v918_v58 = vld [vmem:[#allocation2] sm:$0x1] }
  0x19   :  { %100 = vperm.xlu2 %1044, %v54_v18  }
  0x1e   :  { %95 = vperm.xlu0 %1042, %v53_v19   ;;  %975 = vmatmul.msk.f32.gmra.mxu0 %vm152_vm1, %v33_v20 }
  0x1f   :  { %992 = vmatmul.msk.f32.gmra.mxu1 %vm152_vm1, %v33_v20  ;;  %1009 = vmatmul.msk.f32.gmra.mxu2 %vm152_vm1, %v33_v20 }
  0x20   :  { %1026 = vmatmul.msk.f32.gmra.mxu3 %vm152_vm1, %v33_v20  ;;  %90 = vperm.xlu1 %1043, %v52_v21  }
  0x21   :  { %85 = vperm.xlu2 %1044, %v51_v22  }
  0x26   :  { %80 = vperm.xlu0 %1042, %v50_v23   ;;  %976 = vmatmul.msk.f32.gmra.mxu0 %vm152_vm1, %v34_v24 }
  0x27   :  { %993 = vmatmul.msk.f32.gmra.mxu1 %vm152_vm1, %v34_v24  ;;  %1010 = vmatmul.msk.f32.gmra.mxu2 %vm152_vm1, %v34_v24 }
  0x28   :  { %1027 = vmatmul.msk.f32.gmra.mxu3 %vm152_vm1, %v34_v24  ;;  %75 = vperm.xlu1 %1043, %v49_v25  }
  0x29   :  { %70 = vperm.xlu2 %1044, %v48_v26  }
  0x2e   :  { %65 = vperm.xlu0 %1042, %v47_v27   ;;  %977 = vmatmul.msk.f32.gmra.mxu0 %vm152_vm1, %v35_v28 }
  0x2f   :  { %994 = vmatmul.msk.f32.gmra.mxu1 %vm152_vm1, %v35_v28  ;;  %1011 = vmatmul.msk.f32.gmra.mxu2 %vm152_vm1, %v35_v28 }
  0x30   :  { %1028 = vmatmul.msk.f32.gmra.mxu3 %vm152_vm1, %v35_v28  ;;  %552 = vperm.xlu1 %1043, %v542_v32  }
  0x31   :  { %557 = vperm.xlu2 %1044, %v543_v43  }
  0x36   :  { %978 = vmatmul.msk.f32.gmra.mxu0 %vm152_vm1, %v36_v29  ;;  %562 = vperm.xlu0 %1042, %v544_v34  }
  0x37   :  { %995 = vmatmul.msk.f32.gmra.mxu1 %vm152_vm1, %v36_v29  ;;  %1012 = vmatmul.msk.f32.gmra.mxu2 %vm152_vm1, %v36_v29 }
  0x38   :  { %1029 = vmatmul.msk.f32.gmra.mxu3 %vm152_vm1, %v36_v29  ;;  %567 = vperm.xlu1 %1043, %v545_v35  }
  0x39   :  { %796 = vperm.xlu2 %1044, %v786_v47  }
  0x3e   :  { %979 = vmatmul.msk.f32.gmra.mxu0 %vm152_vm1, %v37_v30  ;;  %801 = vperm.xlu0 %1042, %v787_v37  }
  0x3f   :  { %996 = vmatmul.msk.f32.gmra.mxu1 %vm152_vm1, %v37_v30  ;;  %1013 = vmatmul.msk.f32.gmra.mxu2 %vm152_vm1, %v37_v30 }
  0x40   :  { %1030 = vmatmul.msk.f32.gmra.mxu3 %vm152_vm1, %v37_v30  ;;  %572 = vperm.xlu1 %1043, %v546_v38  }
  0x41   :  { %806 = vperm.xlu2 %1044, %v788_v51  }
  0x46   :  { %980 = vmatmul.msk.f32.gmra.mxu0 %vm152_vm1, %v38_v31  ;;  %577 = vperm.xlu0 %1042, %v547_v40  }
  0x47   :  { %997 = vmatmul.msk.f32.gmra.mxu1 %vm152_vm1, %v38_v31  ;;  %1014 = vmatmul.msk.f32.gmra.mxu2 %vm152_vm1, %v38_v31 }
  0x48   :  { %1031 = vmatmul.msk.f32.gmra.mxu3 %vm152_vm1, %v38_v31  ;;  %811 = vperm.xlu1 %1043, %v789_v41  }
  0x49   :  { %582 = vperm.xlu2 %1044, %v548_v53  }
  0x4e   :  { %981 = vmatmul.msk.f32.gmra.mxu0 %vm152_vm1, %v39_v33  ;;  %816 = vperm.xlu0 %1042, %v790_v44  }
  0x4f   :  { %998 = vmatmul.msk.f32.gmra.mxu1 %vm152_vm1, %v39_v33  ;;  %1015 = vmatmul.msk.f32.gmra.mxu2 %vm152_vm1, %v39_v33 }
  0x50   :  { %1032 = vmatmul.msk.f32.gmra.mxu3 %vm152_vm1, %v39_v33  ;;  %587 = vperm.xlu1 %1043, %v549_v45  }
  0x51   :  { %821 = vperm.xlu2 %1044, %v791_v55  }
  0x56   :  { %982 = vmatmul.msk.f32.gmra.mxu0 %vm152_vm1, %v40_v36  ;;  %826 = vperm.xlu0 %1042, %v792_v48  }
  0x57   :  { %999 = vmatmul.msk.f32.gmra.mxu1 %vm152_vm1, %v40_v36  ;;  %1016 = vmatmul.msk.f32.gmra.mxu2 %vm152_vm1, %v40_v36 }
  0x58   :  { %1033 = vmatmul.msk.f32.gmra.mxu3 %vm152_vm1, %v40_v36  ;;  %831 = vperm.xlu1 %1043, %v793_v49  }
  0x59   :  { %921 = vperm.xlu2 %1044, %v918_v58  }
  0x5e   :  { %983 = vmatmul.msk.f32.gmra.mxu0 %vm152_vm1, %v41_v39 }
  0x5f   :  { %1000 = vmatmul.msk.f32.gmra.mxu1 %vm152_vm1, %v41_v39  ;;  %1017 = vmatmul.msk.f32.gmra.mxu2 %vm152_vm1, %v41_v39 }
  0x60   :  { %1034 = vmatmul.msk.f32.gmra.mxu3 %vm152_vm1, %v41_v39  ;;  %v1428_v49 = vpop.permute.xlu2 %120 }
  0x66   :  { %984 = vmatmul.msk.f32.gmra.mxu0 %vm152_vm1, %v42_v42 }
  0x67   :  { %1001 = vmatmul.msk.f32.gmra.mxu1 %vm152_vm1, %v42_v42  ;;  %1018 = vmatmul.msk.f32.gmra.mxu2 %vm152_vm1, %v42_v42 }
  0x68   :  { %1035 = vmatmul.msk.f32.gmra.mxu3 %vm152_vm1, %v42_v42 }
  0x6b   :  { %v1430_v58 = vpop.permute.xlu2 %115 }
  0x6e   :  { %985 = vmatmul.msk.f32.gmra.mxu0 %vm152_vm1, %v43_v46 }
  0x6f   :  { %1002 = vmatmul.msk.f32.gmra.mxu1 %vm152_vm1, %v43_v46  ;;  %1019 = vmatmul.msk.f32.gmra.mxu2 %vm152_vm1, %v43_v46 }
  0x70   :  { %1036 = vmatmul.msk.f32.gmra.mxu3 %vm152_vm1, %v43_v46 }
  0x76   :  { %986 = vmatmul.msk.f32.gmra.mxu0 %vm152_vm1, %v44_v50 }
  0x77   :  { %1003 = vmatmul.msk.f32.gmra.mxu1 %vm152_vm1, %v44_v50  ;;  %1020 = vmatmul.msk.f32.gmra.mxu2 %vm152_vm1, %v44_v50  ;;  %v141_v39 = vpop.permute.xlu0 %140 }
  0x78   :  { %1037 = vmatmul.msk.f32.gmra.mxu3 %vm152_vm1, %v44_v50  ;;  %v131_v44 = vpop.permute.xlu1 %130 }
  0x7e   :  { %987 = vmatmul.msk.f32.gmra.mxu0 %vm152_vm1, %v45_v52 }
  0x7f   :  { %1004 = vmatmul.msk.f32.gmra.mxu1 %vm152_vm1, %v45_v52  ;;  %1021 = vmatmul.msk.f32.gmra.mxu2 %vm152_vm1, %v45_v52 }
  0x80   :  { %1038 = vmatmul.msk.f32.gmra.mxu3 %vm152_vm1, %v45_v52  ;;  %v136_v50 = vpop.permute.xlu0 %135 }
  0x82   :  { %v126_v55 = vpop.permute.xlu1 %125 }
  0x86   :  { %988 = vmatmul.msk.f32.gmra.mxu0 %vm152_vm1, %v46_v54 }
  0x87   :  { %1005 = vmatmul.msk.f32.gmra.mxu1 %vm152_vm1, %v46_v54  ;;  %1022 = vmatmul.msk.f32.gmra.mxu2 %vm152_vm1, %v46_v54 }
  0x88   :  { %1039 = vmatmul.msk.f32.gmra.mxu3 %vm152_vm1, %v46_v54 }
  0x8b   :  { %v1338_v56 = vpop.f32.mrf.mxu0 }
  0x8c   :  { %1634 = vst [vmem:[#allocation6_spill] sm:$0xff] %v1338_v56  ;;  %v1340_v57 = vpop.f32.mrf.mxu1 }
  0x8d   :  { %1635 = vst [vmem:[#allocation7_spill] sm:$0xff] %v1340_v57 }
  0x92   :  { %v1342_v59 = vpop.f32.mrf.mxu2 }
  0x93   :  { %1636 = vst [vmem:[#allocation8_spill] sm:$0xff] %v1342_v59  ;;  %v1344_v60 = vpop.f32.mrf.mxu3  ;;  %v1346_v61 = vpop.f32.mrf.mxu0 }
  0x94   :  { %1637 = vst [vmem:[#allocation9_spill] sm:$0xff] %v1344_v60  ;;  %v1348_v62 = vpop.f32.mrf.mxu1  ;;  %v1432_v60 = vpop.permute.xlu0 %110 }
  0x95   :  { %1638 = vst [vmem:[#allocation10_spill] sm:$0xff] %v1346_v61 }
  0x96   :  { %1639 = vst [vmem:[#allocation11_spill] sm:$0xff] %v1348_v62  ;;  %v1434_v62 = vpop.permute.xlu1 %105 }
  0x9a   :  { %v1350_v63 = vpop.f32.mrf.mxu2 }
  0x9b   :  { %1640 = vst [vmem:[#allocation12_spill] sm:$0xff] %v1350_v63  ;;  %v1352_v0 = vpop.f32.mrf.mxu3  ;;  %v1354_v1 = vpop.f32.mrf.mxu0 }
  0x9c   :  { %1641 = vst [vmem:[#allocation13_spill] sm:$0xff] %v1352_v0  ;;  %v1356_v2 = vpop.f32.mrf.mxu1 }
  0x9d   :  { %1642 = vst [vmem:[#allocation14_spill] sm:$0xff] %v1354_v1  ;;  %v1438_v1 = vpop.permute.xlu0 %95 }
  0x9e   :  { %1643 = vst [vmem:[#allocation15_spill] sm:$0xff] %v1356_v2 }
  0xa2   :  { %v1358_v3 = vpop.f32.mrf.mxu2 }
  0xa3   :  { %1644 = vst [vmem:[#allocation16_spill] sm:$0xff] %v1358_v3  ;;  %v1360_v4 = vpop.f32.mrf.mxu3  ;;  %v1362_v5 = vpop.f32.mrf.mxu0 }
  0xa4   :  { %1645 = vst [vmem:[#allocation17_spill] sm:$0xff] %v1360_v4  ;;  %v1364_v6 = vpop.f32.mrf.mxu1 }
  0xa5   :  { %1646 = vst [vmem:[#allocation18_spill] sm:$0xff] %v1364_v6 }
  0xaa   :  { %v1366_v7 = vpop.f32.mrf.mxu2 }
  0xab   :  { %1647 = vst [vmem:[#allocation19_spill] sm:$0xff] %v1366_v7  ;;  %v1368_v8 = vpop.f32.mrf.mxu3  ;;  %v1370_v9 = vpop.f32.mrf.mxu0 }
  0xac   :  { %1648 = vst [vmem:[#allocation20_spill] sm:$0xff] %v1368_v8  ;;  %v1372_v10 = vpop.f32.mrf.mxu1 }
  0xb2   :  { %v1374_v11 = vpop.f32.mrf.mxu2 }
  0xb3   :  { %1649 = vst [vmem:[#allocation21_spill] sm:$0xff] %v1374_v11  ;;  %v1376_v12 = vpop.f32.mrf.mxu3  ;;  %v1378_v13 = vpop.f32.mrf.mxu0 }
  0xb4   :  { %1650 = vst [vmem:[#allocation22_spill] sm:$0xff] %v1376_v12  ;;  %v1380_v14 = vpop.f32.mrf.mxu1 }
  0xba   :  { %v1382_v15 = vpop.f32.mrf.mxu2 }
  0xbb   :  { %1651 = vst [vmem:[#allocation23_spill] sm:$0xff] %v1382_v15  ;;  %v1384_v16 = vpop.f32.mrf.mxu3  ;;  %v1386_v17 = vpop.f32.mrf.mxu0 }
  0xbc   :  { %1652 = vst [vmem:[#allocation24_spill] sm:$0xff] %v1384_v16  ;;  %v1388_v18 = vpop.f32.mrf.mxu1  ;;  %v1436_v15 = vpop.permute.xlu2 %100 }
  0xc2   :  { %v1390_v19 = vpop.f32.mrf.mxu2 }
  0xc3   :  { %1653 = vst [vmem:[#allocation25_spill] sm:$0xff] %v1390_v19  ;;  %v1392_v20 = vpop.f32.mrf.mxu3  ;;  %v1394_v21 = vpop.f32.mrf.mxu0 }
  0xc4   :  { %1654 = vst [vmem:[#allocation26_spill] sm:$0xff] %v1392_v20  ;;  %v1396_v22 = vpop.f32.mrf.mxu1 }
  0xca   :  { %v1398_v23 = vpop.f32.mrf.mxu2 }
  0xcb   :  { %v1400_v24 = vpop.f32.mrf.mxu3  ;;  %v1402_v25 = vpop.f32.mrf.mxu0 }
  0xcc   :  { %v1404_v26 = vpop.f32.mrf.mxu1 }
  0xd2   :  { %v1406_v27 = vpop.f32.mrf.mxu2 }
  0xd3   :  { %v1408_v28 = vpop.f32.mrf.mxu3  ;;  %v1410_v29 = vpop.f32.mrf.mxu0 }
  0xd4   :  { %v1412_v30 = vpop.f32.mrf.mxu1 }
  0xda   :  { %v1414_v31 = vpop.f32.mrf.mxu2 }
  0xdb   :  { %v1416_v32 = vpop.f32.mrf.mxu3  ;;  %v257_v33 = vpop.f32.mrf.mxu0 }
  0xdc   :  { %v322_v34 = vpop.f32.mrf.mxu1 }
  0xe2   :  { %v1418_v35 = vpop.f32.mrf.mxu2 }
  0xe3   :  { %v1420_v36 = vpop.f32.mrf.mxu3  ;;  %v260_v37 = vpop.f32.mrf.mxu0 }
  0xe4   :  { %v325_v38 = vpop.f32.mrf.mxu1 }
  0xea   :  { %v1422_v40 = vpop.f32.mrf.mxu2 }
  0xeb   :  { %v1424_v41 = vpop.f32.mrf.mxu3  ;;  %v263_v42 = vpop.f32.mrf.mxu0 }
  0xec   :  { %v328_v43 = vpop.f32.mrf.mxu1  ;;  %v264_v16 = vadd.f32 %v263_v42, %v126_v55 }
  0xed   :  { %v329_v20 = vadd.f32 %v328_v43, %v126_v55 }
  0xf2   :  { %v393_v45 = vpop.f32.mrf.mxu2 }
  0xf3   :  { %v1426_v46 = vpop.f32.mrf.mxu3  ;;  %v266_v47 = vpop.f32.mrf.mxu0 }
  0xf4   :  { %v331_v48 = vpop.f32.mrf.mxu1  ;;  %v267_v56 = vadd.f32 %v266_v47, %v131_v44 }
  0xf5   :  { %v332_v11 = vadd.f32 %v331_v48, %v131_v44 }
  0xf7   :  { %v523_v47 = vmax.f32 %v332_v11, 0.0 }
  0xfa   :  { %v396_v51 = vpop.f32.mrf.mxu2 }
  0xfb   :  { %v461_v52 = vpop.f32.mrf.mxu3  ;;  %v269_v53 = vpop.f32.mrf.mxu0 }
  0xfc   :  { %v334_v54 = vpop.f32.mrf.mxu1  ;;  %v270_v4 = vadd.f32 %v269_v53, %v136_v50  ;;  %v522_v53 = vmax.f32 %v267_v56, 0.0 }
  0xfd   :  { %v335_v57 = vadd.f32 %v334_v54, %v136_v50 }
  0xfe   :  { %v526_v2 = vmax.f32 %v270_v4, 0.0  ;;  %v258_v4 = vadd.f32 %v257_v33, %v1430_v58 }
  0xff   :  { %v527_v19 = vmax.f32 %v335_v57, 0.0  ;;  %v323_v57 = vadd.f32 %v322_v34, %v1430_v58 }
 0x100   :  { %v510_v34 = vmax.f32 %v258_v4, 0.0 }
 0x102   :  { %v399_v59 = vpop.f32.mrf.mxu2 }
 0x103   :  { %v464_v0 = vpop.f32.mrf.mxu3  ;;  %v272_v63 = vpop.f32.mrf.mxu0  ;;  %v400_v48 = vadd.f32 %v399_v59, %v136_v50  ;;  %v462_v59 = vadd.f32 %v461_v52, %v131_v44 }
 0x104   :  { %v273_v3 = vadd.f32 %v272_v63, %v141_v39  ;;  %v337_v8 = vpop.f32.mrf.mxu1  ;;  %v261_v63 = vadd.f32 %v260_v37, %v1428_v49  ;;  %v465_v54 = vadd.f32 %v464_v0, %v136_v50  ;;  %v397_v37 = vadd.f32 %v396_v51, %v131_v44  ;;  %v1461_v52 = vpop.permute.xlu2 %85 }
 0x105   :  { %v338_v7 = vadd.f32 %v337_v8, %v141_v39  ;;  %v394_v0 = vadd.f32 %v393_v45, %v126_v55  ;;  %v528_v33 = vmax.f32 %v400_v48, 0.0  ;;  %v391_v44 = vadd.f32 %v1422_v40, %v1428_v49 }
 0x106   :  { %v530_v12 = vmax.f32 %v273_v3, 0.0  ;;  %v326_v3 = vadd.f32 %v325_v38, %v1428_v49  ;;  %v514_v11 = vmax.f32 %v261_v63, 0.0  ;;  %v529_v43 = vmax.f32 %v465_v54, 0.0 }
 0x107   :  { %v531_v61 = vmax.f32 %v338_v7, 0.0  ;;  %v524_v45 = vmax.f32 %v397_v37, 0.0  ;;  %v525_v51 = vmax.f32 %v462_v59, 0.0  ;;  %v314_v40 = vadd.f32 %v1396_v22, %v1436_v15 }
 0x108   :  { %590 = vmatpush.msrb.mxu0 %v530_v12  ;;  %v518_v12 = vmax.f32 %v264_v16, 0.0  ;;  %v515_v16 = vmax.f32 %v326_v3, 0.0  ;;  %v388_v63 = vadd.f32 %v1418_v35, %v1430_v58  ;;  %v311_v22 = vadd.f32 %v1388_v18, %v1438_v1 }
 0x109   :  { %631 = vmatpush.msrb.mxu1 %v531_v61  ;;  %v519_v61 = vmax.f32 %v329_v20, 0.0  ;;  %v252_v20 = vadd.f32 %v1402_v25, %v1434_v62  ;;  %v249_v25 = vadd.f32 %v1394_v21, %v1436_v15  ;;  %v246_v21 = vadd.f32 %v1386_v17, %v1438_v1 }
 0x10a   :  { %v402_v8 = vpop.f32.mrf.mxu2  ;;  %591 = vmatpush.msrb.mxu0 %v526_v2  ;;  %v255_v2 = vadd.f32 %v1410_v29, %v1432_v60  ;;  %v1451_v29 = vpop.permute.xlu1 %90  ;;  %v385_v35 = vadd.f32 %v1414_v31, %v1432_v60  ;;  %v382_v31 = vadd.f32 %v1406_v27, %v1434_v62  ;;  %v379_v27 = vadd.f32 %v1398_v23, %v1436_v15  ;;  %v1656_v23 = vld [vmem:[#allocation25_spill] sm:$0xff] }
 0x10b   :  { %v403_v7 = vadd.f32 %v402_v8, %v141_v39  ;;  %v467_v42 = vpop.f32.mrf.mxu3  ;;  %632 = vmatpush.msrb.mxu1 %v527_v19  ;;  %v320_v19 = vadd.f32 %v1412_v30, %v1432_v60  ;;  %v511_v30 = vmax.f32 %v323_v57, 0.0  ;;  %v243_v17 = vadd.f32 %v1378_v13, %v1451_v29 }
 0x10c   :  { %v468_v6 = vadd.f32 %v467_v42, %v141_v39  ;;  %592 = vmatpush.msrb.mxu0 %v522_v53  ;;  %v459_v39 = vadd.f32 %v1426_v46, %v126_v55  ;;  %v506_v50 = vmax.f32 %v255_v2, 0.0  ;;  %v456_v46 = vadd.f32 %v1424_v41, %v1428_v49 }
 0x10d   :  { %v532_v56 = vmax.f32 %v403_v7, 0.0  ;;  %633 = vmatpush.msrb.mxu1 %v523_v47  ;;  %v507_v55 = vmax.f32 %v320_v19, 0.0  ;;  %v520_v53 = vmax.f32 %v394_v0, 0.0  ;;  %v502_v41 = vmax.f32 %v252_v20, 0.0  ;;  %v1659_v20 = vld [vmem:[#allocation23_spill] sm:$0xff] }
 0x10e   :  { %v533_v38 = vmax.f32 %v468_v6, 0.0  ;;  %593 = vmatpush.msrb.mxu0 %v518_v12  ;;  %v317_v6 = vadd.f32 %v1404_v26, %v1434_v62  ;;  %v1463_v26 = vpop.permute.xlu0 %80  ;;  %v453_v49 = vadd.f32 %v1420_v36, %v1430_v58  ;;  %v521_v8 = vmax.f32 %v459_v39, 0.0 }
 0x10f   :  { %634 = vmatpush.msrb.mxu1 %v519_v61  ;;  %672 = vmatpush.msrb.mxu2 %v532_v56  ;;  %v516_v47 = vmax.f32 %v391_v44, 0.0  ;;  %v498_v48 = vmax.f32 %v249_v25, 0.0  ;;  %v450_v36 = vadd.f32 %v1416_v32, %v1432_v60  ;;  %v517_v58 = vmax.f32 %v456_v46, 0.0  ;;  %v1662_v25 = vld [vmem:[#allocation10_spill] sm:$0xff] }
 0x110   :  { %713 = vmatpush.msrb.mxu3 %v533_v38  ;;  %594 = vmatpush.msrb.mxu0 %v514_v11  ;;  %v503_v3 = vmax.f32 %v317_v6, 0.0  ;;  %v308_v18 = vadd.f32 %v1380_v14, %v1451_v29  ;;  %v499_v7 = vmax.f32 %v314_v40, 0.0  ;;  %v512_v42 = vmax.f32 %v388_v63, 0.0  ;;  %v1664_v63 = vld [vmem:[#allocation11_spill] sm:$0xff] }
 0x111   :  { %635 = vmatpush.msrb.mxu1 %v515_v16  ;;  %673 = vmatpush.msrb.mxu2 %v528_v33  ;;  %v240_v13 = vadd.f32 %v1370_v9, %v1461_v52  ;;  %v494_v4 = vmax.f32 %v246_v21, 0.0  ;;  %v447_v60 = vadd.f32 %v1408_v28, %v1434_v62  ;;  %v513_v32 = vmax.f32 %v453_v49, 0.0  ;;  %v71_v16 = vpop.permute.xlu2 %70  ;;  %v1665_v21 = vld [vmem:[#allocation22_spill] sm:$0xff] }
 0x112   :  { %714 = vmatpush.msrb.mxu3 %v529_v43  ;;  %595 = vmatpush.msrb.mxu0 %v510_v34  ;;  %v305_v14 = vadd.f32 %v1372_v10, %v1461_v52  ;;  %v495_v12 = vmax.f32 %v311_v22, 0.0  ;;  %v508_v54 = vmax.f32 %v385_v35, 0.0  ;;  %v237_v9 = vadd.f32 %v1362_v5, %v1463_v26  ;;  %v76_v61 = vpop.permute.xlu1 %75  ;;  %v1655_v10 = vld [vmem:[#allocation18_spill] sm:$0xff]  ;;  %v1660_v43 = vld [vmem:[#allocation15_spill] sm:$0xff] }
 0x113   :  { %636 = vmatpush.msrb.mxu1 %v511_v30  ;;  %674 = vmatpush.msrb.mxu2 %v524_v45  ;;  %v490_v57 = vmax.f32 %v243_v17, 0.0  ;;  %v444_v62 = vadd.f32 %v1400_v24, %v1436_v15  ;;  %v509_v28 = vmax.f32 %v450_v36, 0.0  ;;  %v302_v37 = vadd.f32 %v1655_v10, %v1463_v26  ;;  %v1657_v5 = vld [vmem:[#allocation26_spill] sm:$0xff] }
 0x114   :  { %715 = vmatpush.msrb.mxu3 %v525_v51  ;;  %596 = vmatpush.msrb.mxu0 %v506_v50  ;;  %v491_v56 = vmax.f32 %v308_v18, 0.0  ;;  %v376_v2 = vadd.f32 %v1656_v23, %v1438_v1  ;;  %v504_v11 = vmax.f32 %v382_v31, 0.0  ;;  %v486_v59 = vmax.f32 %v240_v13, 0.0  ;;  %v1658_v15 = vld [vmem:[#allocation14_spill] sm:$0xff]  ;;  %v1663_v51 = vld [vmem:[#allocation21_spill] sm:$0xff]  ;;  %v1670_v31 = vld [vmem:[#allocation16_spill] sm:$0xff] }
 0x115   :  { %637 = vmatpush.msrb.mxu1 %v507_v55  ;;  %675 = vmatpush.msrb.mxu2 %v520_v53  ;;  %v441_v38 = vadd.f32 %v1657_v5, %v1438_v1  ;;  %v505_v19 = vmax.f32 %v447_v60, 0.0  ;;  %v234_v24 = vadd.f32 %v1658_v15, %v76_v61  ;;  %v487_v33 = vmax.f32 %v305_v14, 0.0  ;;  %v1661_v1 = vld [vmem:[#allocation24_spill] sm:$0xff]  ;;  %v1671_v60 = vld [vmem:[#allocation17_spill] sm:$0xff] }
 0x116   :  { %716 = vmatpush.msrb.mxu3 %v521_v8  ;;  %597 = vmatpush.msrb.mxu0 %v502_v41  ;;  %v1504_v0 = vpop.permute.xlu0 %65  ;;  %v373_v34 = vadd.f32 %v1659_v20, %v1451_v29  ;;  %v500_v39 = vmax.f32 %v379_v27, 0.0  ;;  %v299_v6 = vadd.f32 %v1660_v43, %v76_v61  ;;  %v482_v30 = vmax.f32 %v237_v9, 0.0  ;;  %v1666_v8 = vld [vmem:[#allocation6_spill] sm:$0xff]  ;;  %v1672_v27 = vld [vmem:[#allocation12_spill] sm:$0xff] }
 0x117   :  { %638 = vmatpush.msrb.mxu1 %v503_v3  ;;  %676 = vmatpush.msrb.mxu2 %v516_v47  ;;  %v438_v44 = vadd.f32 %v1661_v1, %v1451_v29  ;;  %v501_v45 = vmax.f32 %v444_v62, 0.0  ;;  %v231_v50 = vadd.f32 %v1662_v25, %v71_v16  ;;  %v483_v46 = vmax.f32 %v302_v37, 0.0  ;;  %v1667_v3 = vld [vmem:[#allocation19_spill] sm:$0xff]  ;;  %v1673_v62 = vld [vmem:[#allocation13_spill] sm:$0xff]  ;;  %v1674_v37 = vld [vmem:[#allocation8_spill] sm:$0xff] }
 0x118   :  { %717 = vmatpush.msrb.mxu3 %v517_v58  ;;  %598 = vmatpush.msrb.mxu0 %v498_v48  ;;  %v370_v40 = vadd.f32 %v1663_v51, %v1461_v52  ;;  %v496_v55 = vmax.f32 %v376_v2, 0.0  ;;  %v296_v53 = vadd.f32 %v1664_v63, %v71_v16  ;;  %v435_v41 = vadd.f32 %v1665_v21, %v1461_v52  ;;  %v1668_v48 = vld [vmem:[#allocation7_spill] sm:$0xff]  ;;  %v1669_v58 = vld [vmem:[#allocation20_spill] sm:$0xff]  ;;  %v1675_v2 = vld [vmem:[#allocation9_spill] sm:$0xff] }
 0x119   :  { %639 = vmatpush.msrb.mxu1 %v499_v7  ;;  %677 = vmatpush.msrb.mxu2 %v512_v42  ;;  %v497_v49 = vmax.f32 %v441_v38, 0.0  ;;  %v478_v29 = vmax.f32 %v234_v24, 0.0  ;;  %v228_v22 = vadd.f32 %v1666_v8, %v1504_v0  ;;  %v367_v35 = vadd.f32 %v1667_v3, %v1463_v26  ;;  %v535_v15 = vld [vmem:[%s1629_s3 + $0x8] sm:$0xff]  ;;  %v536_v24 = vld [vmem:[%s1629_s3 + $0x10] sm:$0xff]  ;;  %v558_v25 = vpop.permute.xlu2 %557 }
 0x11a   :  { %718 = vmatpush.msrb.mxu3 %v513_v32  ;;  %599 = vmatpush.msrb.mxu0 %v494_v4  ;;  %v492_v47 = vmax.f32 %v373_v34, 0.0  ;;  %v479_v17 = vmax.f32 %v299_v6, 0.0  ;;  %v293_v36 = vadd.f32 %v1668_v48, %v1504_v0  ;;  %v432_v52 = vadd.f32 %v1669_v58, %v1463_v26  ;;  %v540_v20 = vld [vmem:[%s1629_s3 + $0x30] sm:$0xff]  ;;  %v541_v34 = vld [vmem:[%s1629_s3 + $0x38] sm:$0xff]  ;;  %v553_v1 = vpop.permute.xlu1 %552 }
 0x11b   :  { %640 = vmatpush.msrb.mxu1 %v495_v12  ;;  %678 = vmatpush.msrb.mxu2 %v508_v54  ;;  %v493_v18 = vmax.f32 %v438_v44, 0.0  ;;  %v474_v7 = vmax.f32 %v231_v50, 0.0  ;;  %v364_v42 = vadd.f32 %v1670_v31, %v76_v61  ;;  %v488_v13 = vmax.f32 %v370_v40, 0.0 }
 0x11c   :  { %719 = vmatpush.msrb.mxu3 %v509_v28  ;;  %600 = vmatpush.msrb.mxu0 %v490_v57  ;;  %v475_v4 = vmax.f32 %v296_v53, 0.0  ;;  %v429_v32 = vadd.f32 %v1671_v60, %v76_v61  ;;  %v489_v14 = vmax.f32 %v435_v41, 0.0  ;;  %v470_v12 = vmax.f32 %v228_v22, 0.0  ;;  %v534_v57 = vld [vmem:[%s1629_s3] sm:$0xff] }
 0x11d   :  { %641 = vmatpush.msrb.mxu1 %v491_v56  ;;  %679 = vmatpush.msrb.mxu2 %v504_v11  ;;  %v361_v54 = vadd.f32 %v1672_v27, %v71_v16  ;;  %v484_v9 = vmax.f32 %v367_v35, 0.0  ;;  %v471_v26 = vmax.f32 %v293_v36, 0.0  ;;  %v426_v28 = vadd.f32 %v1673_v62, %v71_v16  ;;  %v537_v16 = vld [vmem:[%s1629_s3 + $0x18] sm:$0xff] }
 0x11e   :  { %720 = vmatpush.msrb.mxu3 %v505_v19  ;;  %601 = vmatpush.msrb.mxu0 %v486_v59  ;;  %v485_v10 = vmax.f32 %v432_v52, 0.0  ;;  %v480_v61 = vmax.f32 %v364_v42, 0.0  ;;  %v358_v56 = vadd.f32 %v1674_v37, %v1504_v0  ;;  %v481_v23 = vmax.f32 %v429_v32, 0.0  ;;  %v563_v50 = vpop.permute.xlu0 %562 }
 0x11f   :  { %642 = vmatpush.msrb.mxu1 %v487_v33  ;;  %680 = vmatpush.msrb.mxu2 %v500_v39  ;;  %v423_v11 = vadd.f32 %v1675_v2, %v1504_v0  ;;  %v476_v59 = vmax.f32 %v361_v54, 0.0  ;;  %v477_v5 = vmax.f32 %v426_v28, 0.0  ;;  %v538_v0 = vld [vmem:[%s1629_s3 + $0x20] sm:$0xff]  ;;  %v539_v33 = vld [vmem:[%s1629_s3 + $0x28] sm:$0xff]  ;;  %s1080_s3 = smov [#allocation3]  }
 0x120   :  { %721 = vmatpush.msrb.mxu3 %v501_v45  ;;  %602 = vmatpush.msrb.mxu0 %v482_v30  ;;  %v472_v38 = vmax.f32 %v358_v56, 0.0  ;;  %s961_s12 = sshll.u32 %s1080_s3, 4  ;;  %s962_s12 = int_to_ptr.vmem [resolvable:$true] %s961_s12 }
 0x121   :  { %643 = vmatpush.msrb.mxu1 %v483_v46  ;;  %681 = vmatpush.msrb.mxu2 %v496_v55  ;;  %v473_v19 = vmax.f32 %v423_v11, 0.0  ;;  %v1559_v53 = vpop.permute.xlu2 %796 }
 0x122   :  { %722 = vmatpush.msrb.mxu3 %v497_v49  ;;  %603 = vmatpush.msrb.mxu0 %v478_v29  ;;  %v1557_v40 = vpop.permute.xlu1 %567 }
 0x123   :  { %644 = vmatpush.msrb.mxu1 %v479_v17  ;;  %682 = vmatpush.msrb.mxu2 %v492_v47 }
 0x124   :  { %723 = vmatpush.msrb.mxu3 %v493_v18  ;;  %604 = vmatpush.msrb.mxu0 %v474_v7 }
 0x125   :  { %645 = vmatpush.msrb.mxu1 %v475_v4  ;;  %683 = vmatpush.msrb.mxu2 %v488_v13 }
 0x126   :  { %724 = vmatpush.msrb.mxu3 %v489_v14  ;;  %605 = vmatpush.msrb.mxu0 %v470_v12  ;;  %v1561_v49 = vpop.permute.xlu0 %801 }
 0x127   :  { %646 = vmatpush.msrb.mxu1 %v471_v26  ;;  %684 = vmatpush.msrb.mxu2 %v484_v9 }
 0x128   :  { %725 = vmatpush.msrb.mxu3 %v485_v10  ;;  %606 = vmatmul.f32.vlgmr.msrb.gmra.mxu0 %v534_v57 }
 0x129   :  { %647 = vmatmul.f32.vlgmr.msrb.gmra.mxu1 %v534_v57  ;;  %685 = vmatpush.msrb.mxu2 %v480_v61  ;;  %v1565_v17 = vpop.permute.xlu2 %806 }
 0x12a   :  { %726 = vmatpush.msrb.mxu3 %v481_v23  ;;  %v1563_v22 = vpop.permute.xlu1 %572 }
 0x12b   :  { %686 = vmatpush.msrb.mxu2 %v476_v59 }
 0x12c   :  { %727 = vmatpush.msrb.mxu3 %v477_v5 }
 0x12d   :  { %687 = vmatpush.msrb.mxu2 %v472_v38 }
 0x12e   :  { %728 = vmatpush.msrb.mxu3 %v473_v19  ;;  %688 = vmatmul.f32.vlgmr.msrb.gmra.mxu2 %v534_v57  ;;  %v1567_v58 = vpop.permute.xlu0 %577 }
 0x12f   :  { %729 = vmatmul.f32.vlgmr.msrb.gmra.mxu3 %v534_v57 }
 0x130   :  { %609 = vmatmul.f32.gmra.mxu0 %v535_v15 }
 0x131   :  { %650 = vmatmul.f32.gmra.mxu1 %v535_v15  ;;  %v1580_v37 = vpop.permute.xlu2 %582 }
 0x132   :  { %v1573_v4 = vpop.permute.xlu1 %811 }
 0x136   :  { %691 = vmatmul.f32.gmra.mxu2 %v535_v15 }
 0x137   :  { %732 = vmatmul.f32.gmra.mxu3 %v535_v15  ;;  %v1584_v15 = vpop.permute.xlu0 %816 }
 0x138   :  { %612 = vmatmul.f32.gmra.mxu0 %v536_v24 }
 0x139   :  { %653 = vmatmul.f32.gmra.mxu1 %v536_v24 }
 0x13e   :  { %694 = vmatmul.f32.gmra.mxu2 %v536_v24 }
 0x13f   :  { %735 = vmatmul.f32.gmra.mxu3 %v536_v24 }
 0x140   :  { %615 = vmatmul.f32.gmra.mxu0 %v537_v16 }
 0x141   :  { %656 = vmatmul.f32.gmra.mxu1 %v537_v16 }
 0x146   :  { %697 = vmatmul.f32.gmra.mxu2 %v537_v16 }
 0x147   :  { %738 = vmatmul.f32.gmra.mxu3 %v537_v16 }
 0x148   :  { %618 = vmatmul.f32.gmra.mxu0 %v538_v0 }
 0x149   :  { %659 = vmatmul.f32.gmra.mxu1 %v538_v0 }
 0x14e   :  { %700 = vmatmul.f32.gmra.mxu2 %v538_v0 }
 0x14f   :  { %741 = vmatmul.f32.gmra.mxu3 %v538_v0 }
 0x150   :  { %621 = vmatmul.f32.gmra.mxu0 %v539_v33 }
 0x151   :  { %662 = vmatmul.f32.gmra.mxu1 %v539_v33 }
 0x156   :  { %703 = vmatmul.f32.gmra.mxu2 %v539_v33 }
 0x157   :  { %744 = vmatmul.f32.gmra.mxu3 %v539_v33 }
 0x158   :  { %624 = vmatmul.f32.gmra.mxu0 %v540_v20 }
 0x159   :  { %665 = vmatmul.f32.gmra.mxu1 %v540_v20 }
 0x15e   :  { %706 = vmatmul.f32.gmra.mxu2 %v540_v20 }
 0x15f   :  { %747 = vmatmul.f32.gmra.mxu3 %v540_v20 }
 0x160   :  { %627 = vmatmul.f32.gmra.mxu0 %v541_v34 }
 0x161   :  { %668 = vmatmul.f32.gmra.mxu1 %v541_v34 }
 0x166   :  { %709 = vmatmul.f32.gmra.mxu2 %v541_v34 }
 0x167   :  { %750 = vmatmul.f32.gmra.mxu3 %v541_v34 }
 0x1a5   :  { %v607_v39 = vpop.f32.mrf.mxu0 }
 0x1a6   :  { %v648_v43 = vpop.f32.mrf.mxu1  ;;  %v608_v36 = vadd.f32 %v607_v39, %v553_v1 }
 0x1a7   :  { %v649_v52 = vadd.f32 %v648_v43, %v553_v1 }
 0x1a8   :  { %v754_v13 = vmax.f32 %v608_v36, 0.0 }
 0x1a9   :  { %v755_v60 = vmax.f32 %v649_v52, 0.0 }
 0x1aa   :  { %v834_v62 = vmul.f32 %v1559_v53, %v754_v13 }
 0x1ab   :  { %v835_v56 = vmul.f32 %v1559_v53, %v755_v60 }
 0x1ad   :  { %v610_v6 = vpop.f32.mrf.mxu0 }
 0x1ae   :  { %v651_v30 = vpop.f32.mrf.mxu1  ;;  %v611_v35 = vadd.f32 %v610_v6, %v558_v25 }
 0x1af   :  { %v652_v48 = vadd.f32 %v651_v30, %v558_v25 }
 0x1b0   :  { %v758_v7 = vmax.f32 %v611_v35, 0.0 }
 0x1b1   :  { %v689_v44 = vpop.f32.mrf.mxu2  ;;  %v759_v42 = vmax.f32 %v652_v48, 0.0 }
 0x1b2   :  { %v730_v45 = vpop.f32.mrf.mxu3  ;;  %v838_v12 = vmul.f32 %v1561_v49, %v758_v7  ;;  %v690_v26 = vadd.f32 %v689_v44, %v553_v1 }
 0x1b3   :  { %v839_v9 = vmul.f32 %v1561_v49, %v759_v42  ;;  %v731_v28 = vadd.f32 %v730_v45, %v553_v1 }
 0x1b4   :  { %v866_v11 = vadd.f32 %v838_v12, %v834_v62  ;;  %v756_v16 = vmax.f32 %v690_v26, 0.0 }
 0x1b5   :  { %v613_v46 = vpop.f32.mrf.mxu0  ;;  %v879_v24 = vadd.f32 %v839_v9, %v835_v56  ;;  %v757_v20 = vmax.f32 %v731_v28, 0.0  ;;  %v827_v56 = vpop.permute.xlu0 %826 }
 0x1b6   :  { %v654_v51 = vpop.f32.mrf.mxu1  ;;  %v614_v32 = vadd.f32 %v613_v46, %v563_v50 }
 0x1b7   :  { %v655_v27 = vadd.f32 %v654_v51, %v563_v50 }
 0x1b8   :  { %v762_v23 = vmax.f32 %v614_v32, 0.0 }
 0x1b9   :  { %v692_v55 = vpop.f32.mrf.mxu2  ;;  %v763_v59 = vmax.f32 %v655_v27, 0.0 }
 0x1ba   :  { %v733_v63 = vpop.f32.mrf.mxu3  ;;  %v693_v57 = vadd.f32 %v692_v55, %v558_v25  ;;  %v842_v6 = vmul.f32 %v1565_v17, %v762_v23 }
 0x1bb   :  { %v734_v5 = vadd.f32 %v733_v63, %v558_v25  ;;  %v843_v25 = vmul.f32 %v1565_v17, %v763_v59 }
 0x1bc   :  { %v760_v0 = vmax.f32 %v693_v57, 0.0  ;;  %v867_v36 = vadd.f32 %v866_v11, %v842_v6 }
 0x1bd   :  { %v616_v21 = vpop.f32.mrf.mxu0  ;;  %v761_v46 = vmax.f32 %v734_v5, 0.0  ;;  %v880_v60 = vadd.f32 %v879_v24, %v843_v25 }
 0x1be   :  { %v657_v41 = vpop.f32.mrf.mxu1  ;;  %v617_v10 = vadd.f32 %v616_v21, %v1557_v40  ;;  %v1592_v21 = vpop.permute.xlu1 %587 }
 0x1bf   :  { %v658_v61 = vadd.f32 %v657_v41, %v1557_v40  ;;  %v836_v41 = vmul.f32 %v1559_v53, %v756_v16  ;;  %v841_v32 = vmul.f32 %v1561_v49, %v761_v46 }
 0x1c0   :  { %v766_v34 = vmax.f32 %v617_v10, 0.0 }
 0x1c1   :  { %v695_v29 = vpop.f32.mrf.mxu2  ;;  %v767_v39 = vmax.f32 %v658_v61, 0.0 }
 0x1c2   :  { %v736_v8 = vpop.f32.mrf.mxu3  ;;  %v696_v30 = vadd.f32 %v695_v29, %v563_v50 }
 0x1c3   :  { %v737_v1 = vadd.f32 %v736_v8, %v563_v50  ;;  %v837_v50 = vmul.f32 %v1559_v53, %v757_v20  ;;  %v846_v8 = vmul.f32 %v1573_v4, %v766_v34 }
 0x1c4   :  { %v764_v52 = vmax.f32 %v696_v30, 0.0 }
 0x1c5   :  { %v619_v3 = vpop.f32.mrf.mxu0  ;;  %v765_v7 = vmax.f32 %v737_v1, 0.0  ;;  %v868_v62 = vadd.f32 %v867_v36, %v846_v8 }
 0x1c6   :  { %v660_v47 = vpop.f32.mrf.mxu1  ;;  %v620_v38 = vadd.f32 %v619_v3, %v1563_v22  ;;  %v840_v3 = vmul.f32 %v1561_v49, %v760_v0  ;;  %v844_v49 = vmul.f32 %v1565_v17, %v764_v52  ;;  %v832_v6 = vpop.permute.xlu1 %831 }
 0x1c7   :  { %v661_v33 = vadd.f32 %v660_v47, %v1563_v22  ;;  %v847_v47 = vmul.f32 %v1573_v4, %v767_v39  ;;  %v845_v23 = vmul.f32 %v1565_v17, %v765_v7 }
 0x1c8   :  { %v770_v51 = vmax.f32 %v620_v38, 0.0  ;;  %v892_v9 = vadd.f32 %v840_v3, %v836_v41 }
 0x1c9   :  { %v1569_v18 = vpop.f32.mrf.mxu2  ;;  %v771_v35 = vmax.f32 %v661_v33, 0.0  ;;  %v881_v28 = vadd.f32 %v880_v60, %v847_v47 }
 0x1ca   :  { %v1571_v31 = vpop.f32.mrf.mxu3  ;;  %v699_v26 = vadd.f32 %v1569_v18, %v1557_v40 }
 0x1cb   :  { %v851_v53 = vmul.f32 %v1584_v15, %v771_v35  ;;  %v740_v10 = vadd.f32 %v1571_v31, %v1557_v40 }
 0x1cc   :  { %v768_v20 = vmax.f32 %v699_v26, 0.0 }
 0x1cd   :  { %v622_v14 = vpop.f32.mrf.mxu0  ;;  %v882_v33 = vadd.f32 %v881_v28, %v851_v53  ;;  %v769_v34 = vmax.f32 %v740_v10, 0.0 }
 0x1ce   :  { %v663_v54 = vpop.f32.mrf.mxu1  ;;  %v623_v43 = vadd.f32 %v622_v14, %v1567_v58  ;;  %v850_v14 = vmul.f32 %v1584_v15, %v770_v51  ;;  %v848_v35 = vmul.f32 %v1573_v4, %v768_v20 }
 0x1cf   :  { %v664_v44 = vadd.f32 %v663_v54, %v1567_v58  ;;  %v822_v54 = vpop.permute.xlu2 %821 }
 0x1d0   :  { %v774_v48 = vmax.f32 %v623_v43, 0.0  ;;  %v869_v38 = vadd.f32 %v868_v62, %v850_v14 }
 0x1d1   :  { %v701_v2 = vpop.f32.mrf.mxu2  ;;  %v775_v42 = vmax.f32 %v664_v44, 0.0 }
 0x1d2   :  { %v742_v19 = vpop.f32.mrf.mxu3  ;;  %v854_v61 = vmul.f32 %v822_v54, %v774_v48  ;;  %v702_v59 = vadd.f32 %v701_v2, %v1563_v22 }
 0x1d3   :  { %v855_v11 = vmul.f32 %v822_v54, %v775_v42  ;;  %v743_v24 = vadd.f32 %v742_v19, %v1563_v22 }
 0x1d4   :  { %v870_v39 = vadd.f32 %v869_v38, %v854_v61  ;;  %v772_v30 = vmax.f32 %v702_v59, 0.0 }
 0x1d5   :  { %v625_v45 = vpop.f32.mrf.mxu0  ;;  %v883_v2 = vadd.f32 %v882_v33, %v855_v11  ;;  %v773_v44 = vmax.f32 %v743_v24, 0.0 }
 0x1d6   :  { %v626_v55 = vadd.f32 %v625_v45, %v1580_v37  ;;  %v666_v63 = vpop.f32.mrf.mxu1  ;;  %v852_v7 = vmul.f32 %v1584_v15, %v772_v30 }
 0x1d7   :  { %v667_v29 = vadd.f32 %v666_v63, %v1580_v37  ;;  %v853_v42 = vmul.f32 %v1584_v15, %v773_v44 }
 0x1d8   :  { %v778_v12 = vmax.f32 %v626_v55, 0.0  ;;  %v905_v55 = vadd.f32 %v841_v32, %v837_v50 }
 0x1d9   :  { %v704_v13 = vpop.f32.mrf.mxu2  ;;  %v779_v57 = vmax.f32 %v667_v29, 0.0  ;;  %v849_v29 = vmul.f32 %v1573_v4, %v769_v34  ;;  %v922_v34 = vpop.permute.xlu2 %921 }
 0x1da   :  { %v745_v27 = vpop.f32.mrf.mxu3  ;;  %v858_v18 = vmul.f32 %v827_v56, %v778_v12  ;;  %v705_v17 = vadd.f32 %v704_v13, %v1567_v58  ;;  %v906_v48 = vadd.f32 %v905_v55, %v845_v23 }
 0x1db   :  { %v859_v40 = vmul.f32 %v827_v56, %v779_v57  ;;  %v746_v1 = vadd.f32 %v745_v27, %v1567_v58  ;;  %v893_v58 = vadd.f32 %v892_v9, %v844_v49 }
 0x1dc   :  { %v871_v45 = vadd.f32 %v870_v39, %v858_v18  ;;  %v776_v8 = vmax.f32 %v705_v17, 0.0 }
 0x1dd   :  { %v628_v5 = vpop.f32.mrf.mxu0  ;;  %v884_v63 = vadd.f32 %v883_v2, %v859_v40  ;;  %v777_v36 = vmax.f32 %v746_v1, 0.0  ;;  %v894_v14 = vadd.f32 %v893_v58, %v848_v35 }
 0x1de   :  { %v629_v16 = vadd.f32 %v628_v5, %v1592_v21  ;;  %v669_v0 = vpop.f32.mrf.mxu1  ;;  %v856_v12 = vmul.f32 %v822_v54, %v776_v8 }
 0x1df   :  { %v670_v31 = vadd.f32 %v669_v0, %v1592_v21  ;;  %v857_v53 = vmul.f32 %v822_v54, %v777_v36  ;;  %v895_v57 = vadd.f32 %v894_v14, %v852_v7  ;;  %v951_v36 = vlaneseq }
 0x1e0   :  { %v782_v43 = vmax.f32 %v629_v16, 0.0 }
 0x1e1   :  { %v783_v22 = vmax.f32 %v670_v31, 0.0  ;;  %v707_v19 = vpop.f32.mrf.mxu2  ;;  %v896_v11 = vadd.f32 %v895_v57, %v856_v12  ;;  %vm953_vm5 = vcmp.lt.s32.totalorder %v951_v36, 512 }
 0x1e2   :  { %v862_v25 = vmul.f32 %v832_v6, %v782_v43  ;;  %v708_v46 = vadd.f32 %v707_v19, %v1580_v37  ;;  %v748_v51 = vpop.f32.mrf.mxu3 }
 0x1e3   :  { %v863_v41 = vmul.f32 %v832_v6, %v783_v22  ;;  %v749_v3 = vadd.f32 %v748_v51, %v1580_v37  ;;  %v907_v37 = vadd.f32 %v906_v48, %v849_v29 }
 0x1e4   :  { %v872_v47 = vadd.f32 %v871_v45, %v862_v25  ;;  %v780_v50 = vmax.f32 %v708_v46, 0.0 }
 0x1e5   :  { %v885_v52 = vadd.f32 %v884_v63, %v863_v41  ;;  %v781_v32 = vmax.f32 %v749_v3, 0.0  ;;  %v908_v9 = vadd.f32 %v907_v37, %v853_v42 }
 0x1e6   :  { %v873_v13 = vrot.slane %v872_v47, 4  ;;  %v860_v62 = vmul.f32 %v827_v56, %v780_v50 }
 0x1e7   :  { %v886_v60 = vrot.slane %v885_v52, 4  ;;  %v861_v15 = vmul.f32 %v827_v56, %v781_v32  ;;  %v909_v5 = vadd.f32 %v908_v9, %v857_v53 }
 0x1e8   :  { %v874_v27 = vadd.f32 %v873_v13, %v872_v47  ;;  %v897_v18 = vadd.f32 %v896_v11, %v860_v62 }
 0x1e9   :  { %v887_v4 = vadd.f32 %v886_v60, %v885_v52  ;;  %v710_v26 = vpop.f32.mrf.mxu2  ;;  %v910_v33 = vadd.f32 %v909_v5, %v861_v15 }
 0x1ea   :  { %v711_v28 = vadd.f32 %v710_v26, %v1592_v21  ;;  %v751_v10 = vpop.f32.mrf.mxu3  ;;  %v875_v61 = vrot.slane %v874_v27, 2 }
 0x1eb   :  { %v888_v49 = vrot.slane %v887_v4, 2  ;;  %v752_v23 = vadd.f32 %v751_v10, %v1592_v21  ;;  %v924_v21 = vperm.slane %v922_v34, 0 }
 0x1ec   :  { %v784_v59 = vmax.f32 %v711_v28, 0.0  ;;  %v876_v16 = vadd.f32 %v875_v61, %v874_v27 }
 0x1ed   :  { %v889_v38 = vadd.f32 %v888_v49, %v887_v4  ;;  %v785_v24 = vmax.f32 %v752_v23, 0.0 }
 0x1ee   :  { %v864_v54 = vmul.f32 %v832_v6, %v784_v59  ;;  %v877_v17 = vrot.slane %v876_v16, 1 }
 0x1ef   :  { %v890_v0 = vrot.slane %v889_v38, 1  ;;  %v865_v20 = vmul.f32 %v832_v6, %v785_v24 }
 0x1f0   :  { %v898_v40 = vadd.f32 %v897_v18, %v864_v54  ;;  %v878_v22 = vadd.f32 %v877_v17, %v876_v16 }
 0x1f1   :  { %v911_v31 = vadd.f32 %v910_v33, %v865_v20  ;;  %v891_v43 = vadd.f32 %v890_v0, %v889_v38 }
 0x1f2   :  { %v899_v39 = vrot.slane %v898_v40, 4  ;;  %v925_v51 = vadd.f32 %v924_v21, %v878_v22 }
 0x1f3   :  { %v912_v56 = vrot.slane %v911_v31, 4  ;;  %v926_v19 = vadd.f32 %v924_v21, %v891_v43 }
 0x1f4   :  { %v900_v2 = vadd.f32 %v899_v39, %v898_v40 }
 0x1f5   :  { %v913_v30 = vadd.f32 %v912_v56, %v911_v31  ;;  %1045 = vtanh.f32 %v926_v19 }
 0x1f6   :  { %v901_v1 = vrot.slane %v900_v2, 2  ;;  %1047 = vtanh.f32 %v925_v51 }
 0x1f7   :  { %v914_v44 = vrot.slane %v913_v30, 2 }
 0x1f8   :  { %v902_v45 = vadd.f32 %v901_v1, %v900_v2 }
 0x1f9   :  { %v915_v25 = vadd.f32 %v914_v44, %v913_v30 }
 0x1fa   :  { %v903_v46 = vrot.slane %v902_v45, 1 }
 0x1fb   :  { %v916_v55 = vrot.slane %v915_v25, 1  ;;  %v1046_v35 = vpop.eup %1045 }
 0x1fc   :  { %v904_v6 = vadd.f32 %v903_v46, %v902_v45  ;;  %v934_v29 = vmul.f32 2.0, %v1046_v35  ;;  %v1048_v8 = vpop.eup %1047 }
 0x1fd   :  { %v917_v63 = vadd.f32 %v916_v55, %v915_v25  ;;  %v933_v13 = vmul.f32 2.0, %v1048_v8 }
 0x1fe   :  { %v927_v41 = vadd.f32 %v924_v21, %v904_v6  ;;  %v941_v7 = vrot.slane %v934_v29, 7 }
 0x1ff   :  { %v928_v3 = vadd.f32 %v924_v21, %v917_v63 }
 0x200   :  { %1049 = vtanh.f32 %v927_v41  ;;  %v945_v60 = vsel %vm944_vm2, %v933_v13, %v941_v7 }
 0x201   :  { %1051 = vtanh.f32 %v928_v3 }
 0x206   :  { %v1050_v47 = vpop.eup %1049 }
 0x207   :  { %v1052_v58 = vpop.eup %1051  ;;  %v935_v48 = vmul.f32 2.0, %v1050_v47 }
 0x208   :  { %v936_v52 = vmul.f32 2.0, %v1052_v58 }
 0x209   :  { %v942_v42 = vrot.slane %v935_v48, 6 }
 0x20a   :  { %v943_v50 = vrot.slane %v936_v52, 5 }
 0x20c   :  { %v947_v32 = vsel %vm946_vm3, %v942_v42, %v943_v50 }
 0x20d   :  { %v949_v14 = vsel %vm948_vm4, %v945_v60, %v947_v32 }
 0x20e   :  { %955 = vst.msk [vmem:[#allocation3] sm:$0xf] %vm953_vm5, %v949_v14 }
 0x20f   :  { %966 = dma.vmem_to_hbm [thread:$0]  %s962_s12, 64, %s964_s14, [#allocation4]  }
 0x210   :  { %1077 = dma.done.wait [#allocation4], 64  }
 0x211   :  { %1078 = vsyncadd [#allocation4], 4294967232 }
 0x212   :  { %971 = vsyncpa [#allocation4], 1 }

</bundles_post_ra>
